<compile_context>
chip_gen: v7x
topology: tpu7x:2x2x1
jax: 0.10.0
libtpu: 0.0.40
codegen_flags: <defaults>
</compile_context>

<pallas_src>
import functools

import numpy as np
import jax
import jax.numpy as jnp
from jax import lax
from jax.experimental import pallas as pl
from jax.experimental.pallas import tpu as pltpu


def _round_up(x: int, m: int) -> int:
    return (x + m - 1) // m * m


def _readout_pool_kernel(n_nodes, starts_ref, ends_ref, x_ref,
                         w1_ref, b1_ref, w2_ref, b2_ref, out_ref):
    """Pre-MLP + per-graph segment pooling for one (tile_n, D) node tile."""
    c = pl.program_id(0)
    j = pl.program_id(1)
    steps_per_core = pl.num_programs(1)
    tile_n = x_ref.shape[0]
    b_pad = out_ref.shape[0]

    @pl.when(j == 0)
    def _():
        out_ref[...] = jnp.zeros_like(out_ref)

    # Logical node range for this step (may run past n_nodes on the tail tile or on
    # the clamped duplicate step of the second core -> fully masked contribution).
    base = (c * steps_per_core + j) * tile_n

    # Zero out-of-range rows BEFORE any matmul: tail-tile VMEM padding is
    # uninitialized and 0 * NaN would otherwise leak through the pooling matmul.
    row_idx = base + lax.broadcasted_iota(jnp.int32, (tile_n, 1), 0)
    x = jnp.where(row_idx < n_nodes, x_ref[...], 0.0).astype(jnp.bfloat16)

    # ---- pre-MLP (bf16 operands on the MXU, f32 accumulation, f32 bias/ReLU) ----
    h = jnp.dot(x, w1_ref[...], preferred_element_type=jnp.float32) + b1_ref[...]
    h = jnp.maximum(h, 0.0).astype(jnp.bfloat16)
    nodes = (jnp.dot(h, w2_ref[...], preferred_element_type=jnp.float32)
             + b2_ref[...]).astype(jnp.bfloat16)                        # [tile_n, D]

    # ---- per-graph 0/1 segment mask from the tiny [B_pad, 1] offset vectors ----
    node_idx = base + lax.broadcasted_iota(jnp.int32, (b_pad, tile_n), 1)
    seg = jnp.logical_and(node_idx >= starts_ref[...],
                          node_idx < ends_ref[...]).astype(jnp.bfloat16)

    # ---- partial per-graph pooled sums, accumulated in f32 across the j axis ----
    out_ref[...] += jnp.dot(seg, nodes, preferred_element_type=jnp.float32)


def _plan_tiling(N, D, B_pad, requested_tile_n=None, vmem_budget=24 << 20):
    """Pick tile_n by bytes (~1 MiB f32 node tile), clamp to per-core share of N,
    shrink against an explicit VMEM budget, and return a vmem_limit to request."""
    d_lanes = max(_round_up(D, 128), 128)          # lane-padded width in VMEM

    def vmem_bytes(t):
        const = 2 * (2 * D * d_lanes * 2 + 2 * d_lanes * 4 + 2 * B_pad * 4)  # w1,w2,b1,b2,starts,ends
        x_in = 2 * t * d_lanes * 4                                           # double-buffered f32 tile
        inter = 16 * t * d_lanes                                             # x bf16, h f32/bf16, nodes f32/bf16
        seg = 12 * B_pad * t                                                 # iota / mask / bf16 seg
        out = 2 * B_pad * d_lanes * 4                                        # per-core pooled accumulator
        return const + x_in + inter + seg + out

    per_core_cap = max(8, _round_up((max(N, 1) + 1) // 2, 8))
    if requested_tile_n is None:
        requested_tile_n = max(8, (1 << 20) // (4 * d_lanes))
    tile_n = max(8, min(_round_up(requested_tile_n, 8), per_core_cap))
    while tile_n > 8 and vmem_bytes(tile_n) > vmem_budget:
        tile_n = max(8, _round_up(tile_n // 2, 8))

    est = vmem_bytes(tile_n)
    vmem_limit = int(min(max(est + (8 << 20), 32 << 20), 48 << 20))
    return tile_n, vmem_limit


def readout_forward(batch_num_objects, node_states, params, *, tile_n=None):
    """batch_num_objects: static python list of ints; node_states: [N, D] float32."""
    (w1, b1, w2, b2, w3, b3, w4, b4) = params
    N, D = node_states.shape
    B = len(batch_num_objects)
    assert sum(batch_num_objects) == N

    # ---- geometry ----
    B_pad = _round_up(max(B, 8), 8)                       # sublane-aligned batch
    tile, vmem_limit = _plan_tiling(N, D, B_pad, tile_n)
    total_steps = pl.cdiv(N, tile)
    n_cores = 2 if total_steps >= 2 else 1                # node-range split across v7x TCs
    spc = pl.cdiv(total_steps, n_cores)                   # steps per core
    grid = (n_cores, spc)

    # ---- per-graph [start, end) offsets (replaces the dense [B, N] segment matrix) ----
    offs = np.zeros(B + 1, dtype=np.int64)
    offs[1:] = np.cumsum(np.asarray(batch_num_objects, dtype=np.int64))
    starts_np = np.full((B_pad, 1), N, dtype=np.int32)    # padded graphs -> empty segment
    ends_np = np.full((B_pad, 1), N, dtype=np.int32)
    starts_np[:B, 0] = offs[:B]
    ends_np[:B, 0] = offs[1:]
    starts = jnp.asarray(starts_np)
    ends = jnp.asarray(ends_np)

    # ---- small operands only are cast/reshaped host-side; node_states stays raw f32 ----
    w1b = w1.astype(jnp.bfloat16)
    w2b = w2.astype(jnp.bfloat16)
    b1f = b1.reshape(1, D).astype(jnp.float32)
    b2f = b2.reshape(1, D).astype(jnp.float32)

    const = lambda shape: pl.BlockSpec(shape, lambda c, j: (0, 0))
    # Clamp the block index so the (at most one) duplicate step of core 1 stays in
    # bounds; its contribution is zeroed in-kernel via the node_idx >= N mask.
    x_spec = pl.BlockSpec(
        (tile, D), lambda c, j: (jnp.minimum(c * spc + j, total_steps - 1), 0))

    rows_processed = n_cores * spc * tile
    flops = rows_processed * (4 * D * D + 2 * B_pad * D)
    bytes_accessed = (N * D * 4                       # node_states (read once, f32)
                      + 2 * D * D * 2 + 2 * D * 4     # w1, w2, b1, b2
                      + 2 * B_pad * 4                 # starts, ends
                      + n_cores * B_pad * D * 4)      # partial pooled sums

    partials = pl.pallas_call(
        functools.partial(_readout_pool_kernel, N),
        out_shape=jax.ShapeDtypeStruct((n_cores, B_pad, D), jnp.float32),
        grid_spec=pltpu.PrefetchScalarGridSpec(
            num_scalar_prefetch=0,
            grid=grid,
            in_specs=[
                const((B_pad, 1)),                    # starts
                const((B_pad, 1)),                    # ends
                x_spec,                               # node_states tile (f32, cast in-kernel)
                const((D, D)), const((1, D)),         # w1, b1
                const((D, D)), const((1, D)),         # w2, b2
            ],
            out_specs=pl.BlockSpec((None, B_pad, D), lambda c, j: (c, 0, 0)),
        ),
        compiler_params=pltpu.CompilerParams(
            dimension_semantics=("parallel", "arbitrary"),
            vmem_limit_bytes=vmem_limit,
        ),
        cost_estimate=pl.CostEstimate(flops=int(flops), transcendentals=0,
                                      bytes_accessed=int(bytes_accessed)),
    )(starts, ends, node_states, w1b, b1f, w2b, b2f)

    # ---- tiny post-MLP epilogue in plain XLA at full f32 (B x D x D) ----
    pooled = partials.sum(axis=0)[:B]                                  # [B, D] f32
    g = jnp.maximum(pooled @ w3.astype(jnp.float32)
                    + b3.reshape(1, -1).astype(jnp.float32), 0.0)
    out = g @ w4.astype(jnp.float32) + b4.reshape(1, -1).astype(jnp.float32)
    return out


def init_params(key, input_size, output_size):
    """Deterministic synthetic init mimicking nn.Linear (uniform +/- 1/sqrt(fan_in)).
    Weights are stored as [in_features, out_features] (i.e. PyTorch W^T)."""
    ks = jax.random.split(key, 8)

    def linear(kw, kb, fan_in, fan_out):
        bound = 1.0 / np.sqrt(fan_in)
        w = jax.random.uniform(kw, (fan_in, fan_out), jnp.float32, -bound, bound)
        b = jax.random.uniform(kb, (1, fan_out), jnp.float32, -bound, bound)
        return w, b

    w1, b1 = linear(ks[0], ks[1], input_size, input_size)   # pre[0]
    w2, b2 = linear(ks[2], ks[3], input_size, input_size)   # pre[2]
    w3, b3 = linear(ks[4], ks[5], input_size, input_size)   # post[0]
    w4, b4 = linear(ks[6], ks[7], input_size, output_size)  # post[2]
    return (w1, b1, w2, b2, w3, b3, w4, b4)


def readout_reference(batch_num_objects, node_states, params, *, bf16_pre=False):
    """Reference for the original module.  bf16_pre=True mimics the kernel's numerics
    (bf16 operands / f32 accumulation in the pre-MLP, f32 pooling, f32 post-MLP)."""
    (w1, b1, w2, b2, w3, b3, w4, b4) = params
    cast = (lambda a: a.astype(jnp.bfloat16)) if bf16_pre else (lambda a: a)
    x = cast(node_states)
    h = jnp.dot(x, cast(w1), preferred_element_type=jnp.float32) + b1
    h = cast(jnp.maximum(h, 0.0))
    nodes = cast(jnp.dot(h, cast(w2), preferred_element_type=jnp.float32)
                 + b2).astype(jnp.float32)
    outs = []
    off = 0
    for n in batch_num_objects:
        pooled = jnp.sum(nodes[off:off + n], axis=0)
        g = jnp.maximum(pooled @ w3 + b3[0], 0.0)
        outs.append(g @ w4 + b4[0])
        off += n
    return jnp.stack(outs).astype(jnp.float32)


if __name__ == "__main__":
    input_size = 32
    output_size = 8
    # N = 23: exercises the partial tail tile, an odd tile count split across the
    # two-"core" grid axis (clamped duplicate step), and padded empty batch rows.
    batch_num_objects = [5, 6, 5, 7]
    N = sum(batch_num_objects)

    key = jax.random.PRNGKey(0)
    k_params, k_x = jax.random.split(key)
    params = init_params(k_params, input_size, output_size)
    node_states = jax.random.normal(k_x, (N, input_size), dtype=jnp.float32)

    # Small forced tile (multi-step accumulation path) and the auto-sized tile path.
    out_small = readout_forward(batch_num_objects, node_states, params, tile_n=8)
    out_auto = readout_forward(batch_num_objects, node_states, params)
    out_small, out_auto = jax.block_until_ready((out_small, out_auto))

    ref_mixed = readout_reference(batch_num_objects, node_states, params, bf16_pre=True)
    ref_f32 = readout_reference(batch_num_objects, node_states, params, bf16_pre=False)
    for out in (out_small, out_auto):
        assert out.shape == (len(batch_num_objects), output_size)
        # Tight check against the bit-faithful bf16-pre / f32-post reference.
        np.testing.assert_allclose(np.asarray(out), np.asarray(ref_mixed),
                                   rtol=2e-3, atol=2e-3)
        # Loose check against the original full-f32 module semantics.
        np.testing.assert_allclose(np.asarray(out), np.asarray(ref_f32),
                                   rtol=1e-1, atol=1e-1)

    print("KERNEL_OK")
</pallas_src>

<mosaic_0001>
module attributes {stable_mosaic.version = 11 : i64} {
  func.func @_readout_pool_kernel(%arg0: i32, %arg1: i32, %arg2: memref<8x1xi32, #tpu.memory_space<vmem>>, %arg3: memref<8x1xi32, #tpu.memory_space<vmem>>, %arg4: memref<8x32xf32, #tpu.memory_space<vmem>>, %arg5: memref<32x32xbf16, #tpu.memory_space<vmem>>, %arg6: memref<1x32xf32, #tpu.memory_space<vmem>>, %arg7: memref<32x32xbf16, #tpu.memory_space<vmem>>, %arg8: memref<1x32xf32, #tpu.memory_space<vmem>>, %arg9: memref<1x8x32xf32, #tpu.memory_space<vmem>>) attributes {dimension_semantics = [#tpu.dimension_semantics<parallel>, #tpu.dimension_semantics<arbitrary>], iteration_bounds = array<i64: 2, 2>, scalar_prefetch = 0 : i64, scratch_operands = 0 : i64, tpu.core_type = #tpu.core_type<tc>, window_params = [{pipeline_mode = #tpu.pipeline_mode<synchronous>, transform_indices = @transform_0, window_bounds = array<i64: 8, 1>}, {pipeline_mode = #tpu.pipeline_mode<synchronous>, transform_indices = @transform_1, window_bounds = array<i64: 8, 1>}, {transform_indices = @transform_2, window_bounds = array<i64: 8, 32>}, {pipeline_mode = #tpu.pipeline_mode<synchronous>, transform_indices = @transform_3, window_bounds = array<i64: 32, 32>}, {pipeline_mode = #tpu.pipeline_mode<synchronous>, transform_indices = @transform_4, window_bounds = array<i64: 1, 32>}, {pipeline_mode = #tpu.pipeline_mode<synchronous>, transform_indices = @transform_5, window_bounds = array<i64: 32, 32>}, {pipeline_mode = #tpu.pipeline_mode<synchronous>, transform_indices = @transform_6, window_bounds = array<i64: 1, 32>}, {transform_indices = @transform_7, window_bounds = array<i64: 1, 8, 32>}]} {
    %c0_i32 = arith.constant 0 : i32
    %0 = arith.cmpi eq, %arg1, %c0_i32 : i32
    %1 = arith.extui %0 : i1 to i32
    %c0_i32_0 = arith.constant 0 : i32
    %2 = arith.cmpi ne, %1, %c0_i32_0 : i32
    scf.if %2 {
      %cst_24 = arith.constant 0.000000e+00 : f32
      %51 = vector.broadcast %cst_24 : f32 to vector<8x32xf32>
      %c0_25 = arith.constant 0 : index
      %c0_26 = arith.constant 0 : index
      %c0_27 = arith.constant 0 : index
      %52 = vector.load %arg9[%c0_25, %c0_26, %c0_27] : memref<1x8x32xf32, #tpu.memory_space<vmem>>, vector<1x8x32xf32>
      %53 = vector.shape_cast %52 : vector<1x8x32xf32> to vector<8x32xf32>
      %54 = vector.shape_cast %51 : vector<8x32xf32> to vector<1x8x32xf32>
      tpu.vector_store %arg9[%c0_25, %c0_26, %c0_27], %54 {strides = array<i32>} : memref<1x8x32xf32, #tpu.memory_space<vmem>>, vector<1x8x32xf32>,
    } else {
    }
    %c2_i32 = arith.constant 2 : i32
    %3 = arith.muli %arg0, %c2_i32 : i32
    %4 = arith.addi %3, %arg1 : i32
    %c8_i32 = arith.constant 8 : i32
    %5 = arith.muli %4, %c8_i32 : i32
    %6 = tpu.iota {dimensions = array<i32: 0>} : vector<8x1xi32>
    %7 = vector.broadcast %5 : i32 to vector<8x1xi32>
    %8 = arith.addi %7, %6 : vector<8x1xi32>
    %c23_i32 = arith.constant 23 : i32
    %9 = vector.broadcast %c23_i32 : i32 to vector<8x1xi32>
    %10 = arith.cmpi slt, %8, %9 : vector<8x1xi32>
    %c0 = arith.constant 0 : index
    %c0_1 = arith.constant 0 : index
    %11 = vector.load %arg4[%c0, %c0_1] : memref<8x32xf32, #tpu.memory_space<vmem>>, vector<8x32xf32>
    %cst = arith.constant 0.000000e+00 : f32
    %12 = vector.shape_cast %10 : vector<8x1xi1> to vector<8x1xi1>
    %13 = vector.broadcast %12 : vector<8x1xi1> to vector<8x32xi1>
    %14 = vector.broadcast %cst : f32 to vector<8x32xf32>
    %15 = arith.select %13, %11, %14 : vector<8x32xi1>, vector<8x32xf32>
    %16 = arith.truncf %15 : vector<8x32xf32> to vector<8x32xbf16>
    %c0_2 = arith.constant 0 : index
    %c0_3 = arith.constant 0 : index
    %17 = vector.load %arg5[%c0_2, %c0_3] : memref<32x32xbf16, #tpu.memory_space<vmem>>, vector<32x32xbf16>
    %cst_4 = arith.constant dense<0.000000e+00> : vector<8x32xf32>
    %18 = tpu.matmul %16, %17, %cst_4 {dimension_numbers = #tpu.dot_dimension_numbers<[1], [0], [0], [1], [0, 0, 1, 1], [], []>} : vector<8x32xbf16>, vector<32x32xbf16>, vector<8x32xf32> -> vector<8x32xf32>
    %c0_5 = arith.constant 0 : index
    %c0_6 = arith.constant 0 : index
    %19 = vector.load %arg6[%c0_5, %c0_6] : memref<1x32xf32, #tpu.memory_space<vmem>>, vector<1x32xf32>
    %20 = vector.broadcast %19 : vector<1x32xf32> to vector<8x32xf32>
    %21 = arith.addf %18, %20 : vector<8x32xf32>
    %cst_7 = arith.constant 0.000000e+00 : f32
    %22 = vector.broadcast %cst_7 : f32 to vector<8x32xf32>
    %23 = arith.maximumf %21, %22 : vector<8x32xf32>
    %24 = arith.truncf %23 : vector<8x32xf32> to vector<8x32xbf16>
    %c0_8 = arith.constant 0 : index
    %c0_9 = arith.constant 0 : index
    %25 = vector.load %arg7[%c0_8, %c0_9] : memref<32x32xbf16, #tpu.memory_space<vmem>>, vector<32x32xbf16>
    %cst_10 = arith.constant dense<0.000000e+00> : vector<8x32xf32>
    %26 = tpu.matmul %24, %25, %cst_10 {dimension_numbers = #tpu.dot_dimension_numbers<[1], [0], [0], [1], [0, 0, 1, 1], [], []>} : vector<8x32xbf16>, vector<32x32xbf16>, vector<8x32xf32> -> vector<8x32xf32>
    %c0_11 = arith.constant 0 : index
    %c0_12 = arith.constant 0 : index
    %27 = vector.load %arg8[%c0_11, %c0_12] : memref<1x32xf32, #tpu.memory_space<vmem>>, vector<1x32xf32>
    %28 = vector.broadcast %27 : vector<1x32xf32> to vector<8x32xf32>
    %29 = arith.addf %26, %28 : vector<8x32xf32>
    %30 = arith.truncf %29 : vector<8x32xf32> to vector<8x32xbf16>
    %31 = tpu.iota {dimensions = array<i32: 1>} : vector<8x8xi32>
    %32 = vector.broadcast %5 : i32 to vector<8x8xi32>
    %33 = arith.addi %32, %31 : vector<8x8xi32>
    %c0_13 = arith.constant 0 : index
    %c0_14 = arith.constant 0 : index
    %34 = vector.load %arg2[%c0_13, %c0_14] : memref<8x1xi32, #tpu.memory_space<vmem>>, vector<8x1xi32>
    %35 = vector.broadcast %34 : vector<8x1xi32> to vector<8x8xi32>
    %36 = arith.cmpi sge, %33, %35 : vector<8x8xi32>
    %c0_15 = arith.constant 0 : index
    %c0_16 = arith.constant 0 : index
    %37 = vector.load %arg3[%c0_15, %c0_16] : memref<8x1xi32, #tpu.memory_space<vmem>>, vector<8x1xi32>
    %38 = vector.broadcast %37 : vector<8x1xi32> to vector<8x8xi32>
    %39 = arith.cmpi slt, %33, %38 : vector<8x8xi32>
    %40 = arith.andi %36, %39 : vector<8x8xi1>
    %41 = arith.extui %40 : vector<8x8xi1> to vector<8x8xi32>
    %42 = arith.sitofp %41 : vector<8x8xi32> to vector<8x8xf32>
    %43 = arith.truncf %42 : vector<8x8xf32> to vector<8x8xbf16>
    %c0_17 = arith.constant 0 : index
    %c0_18 = arith.constant 0 : index
    %c0_19 = arith.constant 0 : index
    %44 = vector.load %arg9[%c0_17, %c0_18, %c0_19] : memref<1x8x32xf32, #tpu.memory_space<vmem>>, vector<1x8x32xf32>
    %45 = vector.shape_cast %44 : vector<1x8x32xf32> to vector<8x32xf32>
    %cst_20 = arith.constant dense<0.000000e+00> : vector<8x32xf32>
    %46 = tpu.matmul %43, %30, %cst_20 {dimension_numbers = #tpu.dot_dimension_numbers<[1], [0], [0], [1], [0, 0, 1, 1], [], []>} : vector<8x8xbf16>, vector<8x32xbf16>, vector<8x32xf32> -> vector<8x32xf32>
    %47 = arith.addf %45, %46 : vector<8x32xf32>
    %c0_21 = arith.constant 0 : index
    %c0_22 = arith.constant 0 : index
    %c0_23 = arith.constant 0 : index
    %48 = vector.load %arg9[%c0_21, %c0_22, %c0_23] : memref<1x8x32xf32, #tpu.memory_space<vmem>>, vector<1x8x32xf32>
    %49 = vector.shape_cast %48 : vector<1x8x32xf32> to vector<8x32xf32>
    %50 = vector.shape_cast %47 : vector<8x32xf32> to vector<1x8x32xf32>
    tpu.vector_store %arg9[%c0_21, %c0_22, %c0_23], %50 {strides = array<i32>} : memref<1x8x32xf32, #tpu.memory_space<vmem>>, vector<1x8x32xf32>,
    return
  }
  func.func @transform_0(%arg0: i32, %arg1: i32) -> (i32, i32) {
    %c0_i32 = arith.constant 0 : i32
    %c0_i32_0 = arith.constant 0 : i32
    %c0_i32_1 = arith.constant 0 : i32
    return %c0_i32, %c0_i32_0 : i32, i32
  }
  func.func @transform_1(%arg0: i32, %arg1: i32) -> (i32, i32) {
    %c0_i32 = arith.constant 0 : i32
    %c0_i32_0 = arith.constant 0 : i32
    %c0_i32_1 = arith.constant 0 : i32
    return %c0_i32, %c0_i32_0 : i32, i32
  }
  func.func @transform_2(%arg0: i32, %arg1: i32) -> (i32, i32) {
    %c2_i32 = arith.constant 2 : i32
    %0 = arith.muli %arg0, %c2_i32 : i32
    %1 = arith.addi %0, %arg1 : i32
    %c2_i32_0 = arith.constant 2 : i32
    %2 = arith.minsi %1, %c2_i32_0 : i32
    %c0_i32 = arith.constant 0 : i32
    %c0_i32_1 = arith.constant 0 : i32
    return %2, %c0_i32 : i32, i32
  }
  func.func @transform_3(%arg0: i32, %arg1: i32) -> (i32, i32) {
    %c0_i32 = arith.constant 0 : i32
    %c0_i32_0 = arith.constant 0 : i32
    %c0_i32_1 = arith.constant 0 : i32
    return %c0_i32, %c0_i32_0 : i32, i32
  }
  func.func @transform_4(%arg0: i32, %arg1: i32) -> (i32, i32) {
    %c0_i32 = arith.constant 0 : i32
    %c0_i32_0 = arith.constant 0 : i32
    %c0_i32_1 = arith.constant 0 : i32
    return %c0_i32, %c0_i32_0 : i32, i32
  }
  func.func @transform_5(%arg0: i32, %arg1: i32) -> (i32, i32) {
    %c0_i32 = arith.constant 0 : i32
    %c0_i32_0 = arith.constant 0 : i32
    %c0_i32_1 = arith.constant 0 : i32
    return %c0_i32, %c0_i32_0 : i32, i32
  }
  func.func @transform_6(%arg0: i32, %arg1: i32) -> (i32, i32) {
    %c0_i32 = arith.constant 0 : i32
    %c0_i32_0 = arith.constant 0 : i32
    %c0_i32_1 = arith.constant 0 : i32
    return %c0_i32, %c0_i32_0 : i32, i32
  }
  func.func @transform_7(%arg0: i32, %arg1: i32) -> (i32, i32, i32) {
    %c0_i32 = arith.constant 0 : i32
    %c0_i32_0 = arith.constant 0 : i32
    %c0_i32_1 = arith.constant 0 : i32
    return %arg0, %c0_i32, %c0_i32_0 : i32, i32, i32
  }
}

</mosaic_0001>

<bundles_post_ra>
// kernel: tpu_custom_call.1
= control target key start
LH: loop header
LB: loop body
LE: loop exit
PB: predicated region body
PF: predicated region fallthrough
CT: control target
= control target key end

     0   :  { %12 = vsyncpa [#allocation3], 0  ;;  %s1279_s0 = inlined_call_operand.vmem [shape: s32[8,1], index: 0, kind: input, shape index: {}]   ;;  %s1280_s1 = inlined_call_operand.vmem [shape: s32[8,1], index: 1, kind: input, shape index: {}]   ;;  %s1281_s2 = inlined_call_operand.vmem [shape: f32[23,32], index: 2, kind: input, shape index: {}]   ;;  %s1282_s3 = inlined_call_operand.hbm [shape: bf16[32,32], index: 3, kind: input, shape index: {}]   ;;  %s1283_s4 = inlined_call_operand.vmem [shape: f32[1,32], index: 4, kind: input, shape index: {}]   ;;  %s1284_s5 = inlined_call_operand.hbm [shape: bf16[32,32], index: 5, kind: input, shape index: {}]   ;;  %s1285_s6 = inlined_call_operand.vmem [shape: f32[1,32], index: 6, kind: input, shape index: {}]   ;;  %s1286_s7 = inlined_call_operand.hbm [shape: f32[2,8,32], index: 7, kind: output, shape index: {}]  }
   0x1   :  { %13 = vsyncpa [#allocation6], 0 }
   0x2   :  { %14 = vsyncpa [#allocation4], 0 }
   0x3   :  { %16 = vsyncpa [#allocation4 + $0x1], 0  ;;  %s1050_s24 = smov 0   ;;  %s1052_s25 = smov 0  }
   0x4   :  { %s1054_s26 = smov 0   ;;  %s1056_s27 = smov 0  }
   0x5   :  { %s1058_s28 = smov 0   ;;  %s1060_s29 = smov 0  }
   0x6   :  { %s1062_s30 = smov 0   ;;  %s1064_s8 = smov 0  }
   0x7 LB: > { %1296 = sst [smem:[#allocation11_spill]] %s979_s26  ;;  %s674_s9 = sadd.s32 4294967295, %s999_s8   ;;  %s999_s8 = sphi %s1064_s8, %s22_s8   ;;  %s995_s30 = sphi %s1062_s30, %s1318_s30   ;;  %s991_s29 = sphi %s1060_s29, %s1317_s29   ;;  %s987_s28 = sphi %s1058_s28, %s1316_s28   ;;  %s983_s27 = sphi %s1056_s27, %s1315_s27   ;;  %s979_s26 = sphi %s1054_s26, %s1314_s26   ;;  %s975_s25 = sphi %s1052_s25, %s1320_s25   ;;  %s971_s24 = sphi %s1050_s24, %s1319_s24  }
   0x8   : > { %1297 = sst [smem:[#allocation12_spill]] %s991_s29  ;;  %s675_s10 = sadd.s32 4294967294, %s999_s8  }
   0x9   : > { %1298 = sst [smem:[#allocation13_spill]] %s995_s30  ;;  %s31_s11 = sadd.s32 1, %s991_s29 }
   0xa   : > { %s34_s12 = sadd.s32 1, %s995_s30  ;;  %p32_p0 = scmp.ge.s32.totalorder %s31_s11, 2 }
   0xb   : > { %s201_s13 = sadd.s32 1, %s979_s26  ;;  %p211_p1 = scmp.ne.s32.totalorder %s979_s26, %s975_s25 }
   0xc   : > { %p212_p2 = scmp.eq.s32.totalorder %s674_s9, 3  ;;  %s1322_s11 = smov (%p32_p0, %s31_s11), 0 }
   0xd   : > { %1299 = sst [smem:[#allocation14_spill]] %s1322_s11  ;;  %s1324_s12 = smov (!%p32_p0, %s34_s12), %s995_s30 }
   0xe   : > { %p1100_p3 = por %p212_p2, %p211_p1  ;;  %p217_p4 = scmp.ne.s32.totalorder %s975_s25, %s971_s24 }
   0xf   : > { %p36_p5 = scmp.ge.s32.totalorder %s1324_s12, 2  ;;  %p218_p6 = scmp.eq.s32.totalorder %s675_s10, 3 }
  0x10   : > { %s1300_s14 = scalar_select %p1100_p3, 1, 0 }
  0x11   : > { %p678_p7 = scmp.ge.s32.totalorder %s999_s8, 1  ;;  %p225_p8 = scmp.lt.s32.totalorder %s999_s8, 5 }
  0x12   : > { %s1326_s12 = smov (%p36_p5, %s1324_s12), 0  ;;  %p1110_p9 = por %p218_p6, %p217_p4 }
  0x13   : > { %1301 = sst [smem:[#allocation15_spill]] %s1326_s12  ;;  %p1114_p10 = pnand %p678_p7, %p225_p8 }
  0x14   : > { %s1302_s15 = scalar_select %p1110_p9, 1, 0 }
  0x15   : > { %s1304_s16 = scalar_select %p1114_p10, 1, 0 }
  0x16   : > { %1303 = sst [smem:[#allocation16_spill]] %s1302_s15  ;;  %s198_s17 = ssub.s32 %s995_s30, %s1326_s12 }
  0x17   : > { %p199_p11 = scmp.eq.s32.totalorder %s198_s17, 0  ;;  %p748_p12 = pneg %p1114_p10 }
  0x18   : > { %p1122_p13 = scmp.eq.s32.totalorder %s674_s9, 0  ;;  %s1001_s20 = smov [#allocation2]  }
  0x19   : > { %s1127_s19 = scalar_select %p199_p11, %s979_s26, %s201_s13  }
  0x1a   : > { %s1305_s18 = scalar_select %p1122_p13, 1, 0 }
  0x1b   : > { %1306 = sst [smem:[#allocation17_spill]] %s1127_s19  ;;  %s243_s21 = sshll.u32 %s1001_s20, 4  ;;  %s244_s21 = int_to_ptr.vmem [resolvable:$true] %s243_s21 }
  0x1c   : > { %p1131_p0 = pnand %p1122_p13, %p748_p12  ;;  %s841_s9 = scalar_lea.hbm %s1282_s3, 256 }
  0x1d   : > { %p842_p1 = scmp.ne.s32.totalorder %s1282_s3, %s841_s9  ;;  %p848_p6 = scmp.lt.u32.totalorder %s841_s9, %s1282_s3 }
  0x1e   : > { %p843_p2 = pneg %p1131_p0 }
  0x20   : > { %p844_p4 = pnand %p843_p2, %p842_p1 }
  0x22   : > { %p845_p5 = pneg %p844_p4 }
  0x24   : > { %p850_p7 = pnand %p848_p6, %p845_p5 }
  0x26   : > { %853 = shalt.err (!%p850_p7)
}
  0x27   : > { %s854_s11 = scalar_lea.vmem %s244_s21, 256  ;;  %p862_p9 = scmp.lt.s32.totalorder %s244_s21, %s244_s21 }
  0x28   : > { %p855_p8 = scmp.ne.s32.totalorder %s244_s21, %s854_s11  ;;  %p863_p3 = scmp.lt.s32.totalorder %s854_s11, %s854_s11 }
  0x2a   : > { %p857_p11 = pnand %p855_p8, %p843_p2  ;;  %p864_p13 = por %p863_p3, %p862_p9 }
  0x2c   : > { %p858_p12 = pneg %p857_p11 }
  0x2e   : > { %p865_p10 = pnand %p864_p13, %p858_p12 }
  0x30   : > { %868 = shalt.err (!%p865_p10)
}
  0x31   : > { %s1002_s12 = smov 64   ;;  %s1003_s23 = smov 4  }
  0x32   : > { %751 = dma.hbm_to_vmem [thread:$0]  (!%p1131_p0), %s1282_s3, 256, %s244_s21, [#allocation3], %s1002_s12, %s1002_s12, %s1003_s23  }
  0x33   : > { %s1004_s17 = smov [#allocation5]   ;;  %s869_s29 = scalar_lea.hbm %s1284_s5, 256 }
  0x34   : > { %s259_s13 = sshll.u32 %s1004_s17, 4  ;;  %p870_p3 = scmp.ne.s32.totalorder %s1284_s5, %s869_s29  ;;  %s260_s13 = int_to_ptr.vmem [resolvable:$true] %s259_s13 }
  0x35   : > { %p876_p13 = scmp.lt.u32.totalorder %s869_s29, %s1284_s5 }
  0x36   : > { %p872_p9 = pnand %p870_p3, %p843_p2 }
  0x38   : > { %p873_p10 = pneg %p872_p9 }
  0x3a   : > { %p878_p1 = pnand %p876_p13, %p873_p10 }
  0x3c   : > { %881 = shalt.err (!%p878_p1)
}
  0x3d   : > { %s882_s21 = scalar_lea.vmem %s260_s13, 256  ;;  %p890_p7 = scmp.lt.s32.totalorder %s260_s13, %s260_s13 }
  0x3e   : > { %p883_p4 = scmp.ne.s32.totalorder %s260_s13, %s882_s21  ;;  %p891_p8 = scmp.lt.s32.totalorder %s882_s21, %s882_s21 }
  0x40   : > { %p885_p5 = pnand %p883_p4, %p843_p2  ;;  %p892_p11 = por %p891_p8, %p890_p7 }
  0x42   : > { %p886_p6 = pneg %p885_p5 }
  0x44   : > { %p893_p12 = pnand %p892_p11, %p886_p6 }
  0x46   : > { %896 = shalt.err (!%p893_p12)
}
  0x47   : > { %754 = dma.hbm_to_vmem [thread:$0]  (!%p1131_p0), %s1284_s5, 256, %s260_s13, [#allocation6], %s1002_s12, %s1002_s12, %s1003_s23  }
  0x48   : > { %p1308_p3 = scmp.ne.s32.totalorder %s1304_s16, 0 }
  0x49   : > { %p1309_p9 = scmp.ne.s32.totalorder (!%p1308_p3), %s1305_s18, 0 }
  0x4a   : > { %293 = sbr.rel (%p1308_p3) target bundleno = 772 (0x304), region = 48 }
  0x51   : > { %958 = dma.done.wait (%p1309_p9), [#allocation3], 256  }
  0x52   : > { %960 = vsyncadd (%p1309_p9), [#allocation3], 4294967040 }
  0x53   : > { %962 = dma.done.wait (%p1309_p9), [#allocation6], 256  }
  0x54   : > { %964 = vsyncadd (%p1309_p9), [#allocation6], 4294967040  ;;  %s329_s26 = sand.u32 1, %s975_s25   ;;  %s686_s29 = sshll.u32 %s987_s28, 1 }
  0x55   : > { %s685_s15 = sshll.u32 %s329_s26, 3  ;;  %s333_s16 = sadd.s32 %s983_s27, %s686_s29 }
  0x56   : > { %p334_p0 = scmp.lt.s32.totalorder %s333_s16, 2  ;;  %s1195_s17 = scalar_lea.vmem [#allocation7], %s685_s15 }
  0x57   : > { %p691_p2 = scmp.ne.s32.totalorder %s983_s27, 0 }
  0x58   : > { %s335_s22 = scalar_select %p334_p0, %s333_s16, 2 }
  0x59   : > { %348 = sbr.rel (%p691_p2) target bundleno = 96 (0x60), region = 60  ;;  %vm349_vm0 = vcmask (!%p691_p2), 261120   ;;  %v1005_v0 = vmov (!%p691_p2), 0.0  }
  0x5a   : > { %s1328_s22 = smov (!%p334_p0, %s335_s22), 2  ;;  %350 = vst.msk [vmem:[%s1195_s17] sm:$0xff] (!%p691_p2), %vm349_vm0, %v1005_v0 }
  0x5b   : > { %s690_s12 = sshll.u32 %s1328_s22, 3 }
  0x5c   : > { %s339_s9 = scalar_lea.vmem %s1281_s2, %s690_s12 }
  0x60 PF: > { %v837_v1 = vld [vmem:[#allocation2] sm:$0xff]   ;;  %v354_v2 = vlaneseq  ;;  %v1006_v3 = vmov 0.0   ;;  %v838_v4 = vld [vmem:[#allocation2 + $0x8] sm:$0xff]   ;;  %vm1007_vm1 = vmmov 0   ;;  %s693_s18 = sshll.u32 %s333_s16, 3  ;;  %v359_v8 = vld [vmem:[%s339_s9] sm:$0xff] }
  0x61   : > { %716 = vmatprep.subr.bf16.mxu0 %v1006_v3  ;;  %724 = vmatprep.subr.bf16.mxu1 %v1006_v3  ;;  %v356_v6 = vstv %s693_s18  ;;  %vm387_vm3 = vcmask 261120   ;;  %v839_v11 = vld [vmem:[#allocation5] sm:$0xff]   ;;  %v840_v12 = vld [vmem:[#allocation5 + $0x8] sm:$0xff]   ;;  %v1008_v14 = vmov 0   ;;  %vm522_vm7 = vcmask 1043456   ;;  %v517_v38 = vld [vmem:[%s1195_s17] sm:$0xff] }
  0x62   : > { %717 = vmatpush3.bf16.msra.mxu0 %v837_v1  ;;  %720 = vmatprep.mubr.msk.bf16.mxu0 %vm1007_vm1, %v1006_v3  ;;  %v355_v5 = vshrl.u32 %v354_v2, 7  ;;  %v503_v13 = vld [vmem:[%s1279_s0] sm:$0xff]  ;;  %v501_v25 = vand.u32 127, %v354_v2  ;;  %vm518_vm8 = vcmask 64512   ;;  %s705_s15 = sshll.u32 %s987_s28, 7  ;;  %s582_s16 = sshll.u32 %s1195_s17, 4  ;;  %s1224_s16 = int_to_ptr.vmem [resolvable:$true] %s582_s16 }
  0x63   : > { %718 = vmatprep.subr.bf16.mxu0 %v1006_v3  ;;  %728 = vmatprep.mubr.msk.bf16.mxu1 %vm1007_vm1, %v1006_v3  ;;  %v508_v15 = vld [vmem:[%s1280_s1] sm:$0xff]  ;;  %s1222_s23 = scalar_lea.hbm %s1286_s7, %s705_s15  ;;  %s569_s28 = scalar_lea.sflag [#allocation4], %s329_s26 }
  0x64   : > { %v357_v7 = vadd.s32 %v356_v6, %v355_v5  ;;  %725 = vmatpush3.bf16.msra.mxu1 %v839_v11  ;;  %836 = vset.pattern.permute.xlu0 %v1008_v14  ;;  %v694_v16 = vld [vmem:[%s1283_s4] ss:$0 sm:$0xff]  ;;  %v502_v26 = vadd.s32 %v501_v25, %v356_v6  ;;  %s897_s10 = scalar_lea.vmem %s1224_s16, 128  ;;  %p1310_p13 = scmp.ne.s32.totalorder %s1300_s14, 0 }
  0x65   : > { %726 = vmatprep.subr.bf16.mxu1 %v1006_v3  ;;  %505 = vperm.xlu0 %836, %v503_v13   ;;  %v698_v28 = vld [vmem:[%s1285_s6] ss:$0 sm:$0xff]  ;;  %p898_p10 = scmp.ne.s32.totalorder %s1224_s16, %s897_s10  ;;  %s1009_s9 = smov [#allocation7]  }
  0x66   : > { %719 = vmatpush3.bf16.msra.mxu0 %v838_v4  ;;  %vm358_vm2 = vcmp.lt.s32.totalorder %v357_v7, 23  ;;  %s901_s18 = sshll.u32 %s1009_s9, 4  ;;  %s902_s18 = int_to_ptr.vmem [resolvable:$false] %s901_s18 }
  0x67   : > { %v362_v9 = vsel %vm358_vm2, %v359_v8, 0.0  ;;  %732 = vmatprep.subr.bf16.mxu0 %v1006_v3  ;;  %p899_p1 = pnand %p898_p10, %p1310_p13  ;;  %s903_s27 = scalar_lea.vmem %s902_s18, 256 }
  0x68   : > { %v363_v10 = vpack.c.bf16 %v362_v9, %v362_v9  ;;  %727 = vmatpush3.bf16.msra.mxu1 %v840_v12  ;;  %p904_p5 = scmp.lt.s32.totalorder %s1224_s16, %s902_s18  ;;  %p905_p6 = scmp.lt.s32.totalorder %s903_s27, %s897_s10 }
  0x69   : > { %510 = vperm.xlu0 %836, %v508_v15   ;;  %p900_p4 = pneg %p899_p1 }
  0x6a   : > { %721 = vmatmul.mubr.msk.bf16.vlgmr.msra.gmra.mrb[0].mxu0 %vm387_vm3, %v363_v10  ;;  %p906_p7 = por %p905_p6, %p904_p5 }
  0x6b   : > { %734 = vmatprep.mubr.msk.bf16.mxu0 %vm1007_vm1, %v1006_v3 }
  0x6c   : > { %p907_p8 = pnand %p906_p7, %p900_p4 }
  0xe4   : > { %v506_v24 = vpop.permute.xlu0 %505 }
  0xe5   : > { %vm507_vm4 = vcmp.ge.s32.totalorder %v502_v26, %v506_v24 }
  0xe8   : > { %v511_v27 = vpop.permute.xlu0 %510 }
  0xe9   : > { %vm512_vm5 = vcmp.lt.s32.totalorder %v502_v26, %v511_v27 }
  0xea   : > { %vm513_vm6 = vmand %vm507_vm4, %vm512_vm5 }
  0xeb   : > { %v702_v35 = vsel %vm513_vm6, 1.0, %v1006_v3 }
  0xec   : > { %v516_v37 = vpack.c.bf16 %v702_v35, %v702_v35 }
 0x13d   : > { %v425_v17 = vpop.f32.mrb[0].mxu0 }
 0x13e   : > { %v426_v18 = vadd.f32 %v694_v16, %v425_v17  ;;  %v722_v19 = vpop.f32.mrb[1].mxu0 }
 0x13f   : > { %v428_v20 = vpop.f32.mrb[2].mxu0 }
 0x140   : > { %v431_v21 = vmax.f32 %v426_v18, 0.0  ;;  %v723_v22 = vpop.f32.mrb[3].mxu0 }
 0x142   : > { %v432_v23 = vpack.c.bf16 %v431_v21, %v431_v21 }
 0x144   : > { %729 = vmatmul.mubr.msk.bf16.vlgmr.msra.gmra.mrb[0].mxu1 %vm387_vm3, %v432_v23 }
 0x217   : > { %v493_v29 = vpop.f32.mrb[0].mxu1 }
 0x218   : > { %v494_v30 = vadd.f32 %v698_v28, %v493_v29  ;;  %v730_v31 = vpop.f32.mrb[1].mxu1 }
 0x219   : > { %v496_v32 = vpop.f32.mrb[2].mxu1 }
 0x21a   : > { %v499_v33 = vpack.c.bf16 %v494_v30, %v494_v30  ;;  %v731_v34 = vpop.f32.mrb[3].mxu1 }
 0x21c   : > { %v524_v36 = vsel %vm522_vm7, %v499_v33, 0 }
 0x21d   : > { %733 = vmatpush3.bf16.msra.mxu0 %v524_v36 }
 0x220   : > { %735 = vmatmul.mubr.msk.bf16.vlgmr.msra.gmra.mrb[4].mxu0 %vm518_vm8, %v516_v37 }
 0x2f3   : > { %v560_v39 = vpop.f32.mrb[4].mxu0 }
 0x2f4   : > { %v566_v40 = vadd.f32 %v560_v39, %v517_v38  ;;  %v736_v41 = vpop.f32.mrb[5].mxu0 }
 0x2f5   : > { %v563_v42 = vpop.f32.mrb[6].mxu0 }
 0x2f6   : > { %567 = vst.msk [vmem:[%s1195_s17] sm:$0xff] %vm387_vm3, %v566_v40  ;;  %v737_v43 = vpop.f32.mrb[7].mxu0 }
 0x2f7   : > { %910 = shalt.err (!%p907_p8)
}
 0x2f8   : > { %s911_s26 = scalar_lea.hbm %s1222_s23, 128  ;;  %s915_s20 = scalar_lea.hbm %s1286_s7, 256 }
 0x2f9   : > { %p912_p11 = scmp.ne.s32.totalorder %s1222_s23, %s911_s26  ;;  %p916_p9 = scmp.lt.u32.totalorder %s1222_s23, %s1286_s7 }
 0x2fa   : > { %p917_p0 = scmp.lt.u32.totalorder %s915_s20, %s911_s26  ;;  %p919_p10 = scmp.lt.u32.totalorder %s911_s26, %s1222_s23 }
 0x2fb   : > { %p913_p12 = pnand %p912_p11, %p1310_p13 }
 0x2fc   : > { %p918_p2 = por %p917_p0, %p916_p9 }
 0x2fd   : > { %p914_p3 = pneg %p913_p12 }
 0x2fe   : > { %p920_p1 = por %p919_p10, %p918_p2 }
 0x300   : > { %p921_p4 = pnand %p920_p1, %p914_p3 }
 0x302   : > { %924 = shalt.err (!%p921_p4)
}
 0x303   : > { %746 = dma.vmem_to_hbm [thread:$0]  (%p1310_p13), %s1224_s16, 128, %s1222_s23, %s569_s28  }
 0x304 PF: > { %s1311_s30 = sld [smem:[#allocation16_spill]]  ;;  %p763_p5 = scmp.ge.s32.totalorder %s999_s8, 2 }
 0x305   : > { %s594_s19 = sand.u32 1, %s971_s24  }
 0x306   : > { %s595_s29 = scalar_lea.sflag [#allocation4], %s594_s19 }
 0x30a   : > { %p1312_p6 = scmp.ne.s32.totalorder %s1311_s30, 0 }
 0x30c   : > { %p756_p7 = pnand %p763_p5, %p1312_p6 }
 0x30e   : > { %966 = dma.done.wait (!%p756_p7), %s595_s29, 128  }
 0x30f   : > { %968 = vsyncadd (!%p756_p7), %s595_s29, 4294967168  ;;  %s22_s8 = sadd.s32 1, %s999_s8   ;;  %s1313_s15 = sld [smem:[#allocation11_spill]] }
 0x310   : > { %p19_p8 = scmp.ge.s32.totalorder %s22_s8, 6   ;;  %s1314_s26 = sld [smem:[#allocation17_spill]] }
 0x311   : > { %s1315_s27 = sld [smem:[#allocation12_spill]]  ;;  %s1316_s28 = sld [smem:[#allocation13_spill]] }
 0x312   : > { %s1317_s29 = sld [smem:[#allocation14_spill]]  ;;  %s1318_s30 = sld [smem:[#allocation15_spill]] }
 0x313   : > { %s1319_s24 = smov %s975_s25  ;;  %21 = sbr.rel (!%p19_p8) target bundleno = 7 (0x7), region = 96 }
 0x315   : > { %s1320_s25 = smov %s1313_s15 }
 0x31a   :  { %600 = vsyncpa [#allocation3], 1 }
 0x31b   :  { %602 = vsyncpa [#allocation3 + $0x1], 1 }
 0x31c   :  { %603 = vsyncpa [#allocation6], 1 }
 0x31d   :  { %604 = vsyncpa [#allocation4], 1 }
 0x31e   :  { %606 = vsyncpa [#allocation4 + $0x1], 1 }

</bundles_post_ra>
